<compile_context>
chip_gen: v6e
topology: v6e:2x2x1
jax: 0.10.0
libtpu: 0.0.40
codegen_flags: <defaults>
</compile_context>

<pallas_src>
import functools

import jax
import jax.numpy as jnp
from jax import lax
from jax.experimental import pallas as pl
from jax.experimental.pallas import tpu as pltpu

_EPS = 1e-12


def _round_up(x, m):
    return ((x + m - 1) // m) * m


def _normed_linear_kernel(xs_ref, ws_ref, x_ref, w_ref, o_ref, *scratch):
    """Grid = (N/tm, M/tn, K/tk); K (last axis) is the reduction axis."""
    k = pl.program_id(2)
    # float32 output: accumulate in place in the resident output block;
    # otherwise use the f32 scratch accumulator.
    acc_ref = scratch[0] if scratch else o_ref

    @pl.when(k == 0)
    def _():
        acc_ref[...] = jnp.zeros_like(acc_ref)

    # Pure MXU matmul on unnormalized, native-dtype operands; f32 accumulation.
    acc_ref[...] += jnp.dot(x_ref[...], w_ref[...],
                            preferred_element_type=jnp.float32)

    @pl.when(k == pl.num_programs(2) - 1)
    def _():
        # out = acc * (1/||x_row||) * (1/||w_col||): diagonal scaling commutes
        # through the matmul, so this equals normalize-then-matmul exactly.
        o_ref[...] = (acc_ref[...] * xs_ref[...] * ws_ref[...]).astype(o_ref.dtype)


def _select_tiling_caps():
    """Per-generation output-tile caps and scoped-VMEM limit."""
    try:
        kind = jax.devices()[0].device_kind.lower()
    except Exception:
        kind = ""
    try:
        vmem = int(pltpu.get_tpu_info().vmem_capacity_bytes)
    except Exception:
        vmem = 64 * 1024 * 1024  # conservative (v7x per-TensorCore)
    if "v7" in kind or "7x" in kind or vmem < (96 << 20):
        # v7x: 64 MiB VMEM/TC but ~3.2 TB/s HBM -> moderate tiles suffice
        # (~341 flops/byte > ~311 needed); keep footprint well under VMEM.
        return 512, 1024, 48 << 20
    # v5e / v6e: 128 MiB physical VMEM -> large tiles (v6e needs ~650 flops/B).
    return 1024, 2048, 100 << 20


def _footprint_bytes(tm, tn, tk, in_itemsize, out_itemsize, needs_acc_scratch):
    buf = 2 * (tm * tk + tk * tn) * in_itemsize   # double-buffered x / W tiles
    buf += 2 * tm * tn * out_itemsize             # output block
    buf += 2 * (tm + tn) * 4                      # scale vectors (negligible)
    if needs_acc_scratch:
        buf += tm * tn * 4
    return buf


@functools.partial(jax.jit, static_argnames=("out_dtype", "k_block_limit"))
def normed_linear(x, weight, out_dtype=None, k_block_limit=None):
    """out = F.normalize(x, dim=1) @ F.normalize(weight, dim=0)."""
    N, K = x.shape
    K2, M = weight.shape
    assert K == K2, "in_features mismatch"
    out_dtype = jnp.dtype(x.dtype if out_dtype is None else out_dtype)

    # ---- Normalization scales, hoisted out of the K loop.
    # 1/max(||.||, eps) == rsqrt(max(sum_sq, eps^2)) since sqrt is monotone.
    xf = x.astype(jnp.float32)
    wf = weight.astype(jnp.float32)
    x_scale = lax.rsqrt(jnp.maximum(jnp.sum(xf * xf, axis=1, keepdims=True),
                                    _EPS * _EPS))                      # (N, 1)
    w_scale = lax.rsqrt(jnp.maximum(jnp.sum(wf * wf, axis=0, keepdims=True),
                                    _EPS * _EPS))                      # (1, M)

    # ---- Tile selection: sublane multiple per dtype, lane axes multiples of
    # 128 (lane-dense output -> unmasked stores), output-tile caps per chip.
    in_itemsize = max(jnp.dtype(x.dtype).itemsize, jnp.dtype(weight.dtype).itemsize)
    out_itemsize = out_dtype.itemsize
    sublane = {4: 8, 2: 16, 1: 32}.get(jnp.dtype(x.dtype).itemsize, 8)
    tm_cap, tn_cap, vmem_limit = _select_tiling_caps()
    budget = (vmem_limit * 2) // 3

    tm = min(_round_up(N, sublane), tm_cap)
    tn = min(_round_up(M, 128), tn_cap)
    needs_acc_scratch = out_dtype != jnp.dtype(jnp.float32)

    # Prefer a single K block when it fits the VMEM budget: x's block index
    # then depends only on i and W's only on j, so Pallas skips the redundant
    # re-DMAs (each operand read from HBM ~once).  Otherwise tile K at 1024.
    k_full = _round_up(K, 128)
    if k_block_limit is not None:
        tk = min(_round_up(int(k_block_limit), 128), k_full)
    elif _footprint_bytes(tm, tn, k_full, in_itemsize, out_itemsize,
                          needs_acc_scratch) <= budget:
        tk = k_full
    else:
        tk = min(1024, k_full)

    n_pad = _round_up(N, tm)
    m_pad = _round_up(M, tn)
    k_pad = _round_up(K, tk)

    # Zero padding only when a dim doesn't divide its tile: padded K adds 0 to
    # the dot products; padded rows/cols are sliced off after the call.
    # TODO(synk): for large non-divisible shapes, pick tiles from divisors near
    # the target instead of materializing padded HBM copies.
    if (n_pad, k_pad) != (N, K):
        x = jnp.pad(x, ((0, n_pad - N), (0, k_pad - K)))
    if (k_pad, m_pad) != (K, M):
        weight = jnp.pad(weight, ((0, k_pad - K), (0, m_pad - M)))
    if n_pad != N:
        x_scale = jnp.pad(x_scale, ((0, n_pad - N), (0, 0)))
    if m_pad != M:
        w_scale = jnp.pad(w_scale, ((0, 0), (0, m_pad - M)))

    grid = (n_pad // tm, m_pad // tn, k_pad // tk)
    scratch_shapes = [pltpu.VMEM((tm, tn), jnp.float32)] if needs_acc_scratch else []

    out = pl.pallas_call(
        _normed_linear_kernel,
        out_shape=jax.ShapeDtypeStruct((n_pad, m_pad), out_dtype),
        grid_spec=pltpu.PrefetchScalarGridSpec(
            num_scalar_prefetch=0,
            grid=grid,
            in_specs=[
                pl.BlockSpec((tm, 1), lambda i, j, k: (i, 0)),   # 1/||x_row||
                pl.BlockSpec((1, tn), lambda i, j, k: (0, j)),   # 1/||w_col||
                pl.BlockSpec((tm, tk), lambda i, j, k: (i, k)),  # x tile
                pl.BlockSpec((tk, tn), lambda i, j, k: (k, j)),  # W tile
            ],
            out_specs=pl.BlockSpec((tm, tn), lambda i, j, k: (i, j)),
            scratch_shapes=scratch_shapes,
        ),
        compiler_params=pltpu.CompilerParams(
            dimension_semantics=("parallel", "parallel", "arbitrary"),
            vmem_limit_bytes=vmem_limit,
        ),
    )(x_scale, w_scale, x, weight)

    return out[:N, :M]


def init_normed_linear_weight(key, in_features, out_features):
    """Mimics: torch.Tensor(in,out).uniform_(-1,1).renorm_(2, 1, 1e-05).mul_(1e5)."""
    w = jax.random.uniform(key, (in_features, out_features),
                           dtype=jnp.float32, minval=-1.0, maxval=1.0)
    col_norm = jnp.sqrt(jnp.sum(w * w, axis=0, keepdims=True))
    scale = jnp.where(col_norm > 1e-5, 1e-5 / col_norm, 1.0)
    return w * scale * 1e5


def reference_normed_linear(x, w):
    xn = x / jnp.maximum(jnp.linalg.norm(x, axis=1, keepdims=True), _EPS)
    wn = w / jnp.maximum(jnp.linalg.norm(w, axis=0, keepdims=True), _EPS)
    return jnp.dot(xn, wn, precision=lax.Precision.HIGHEST)


if __name__ == "__main__":
    key = jax.random.PRNGKey(0)
    kx, kw, kx2, kw2 = jax.random.split(key, 4)

    # --- Test 1: small f32 (accumulate-directly-into-output path).
    N, in_f, out_f = 8, 32, 16
    x = jax.random.normal(kx, (N, in_f), dtype=jnp.float32)
    w = init_normed_linear_weight(kw, in_f, out_f)
    ref = reference_normed_linear(x, w)
    out = jax.block_until_ready(normed_linear(x, w))
    assert out.shape == (N, out_f)
    assert jnp.allclose(out, ref, atol=1e-4, rtol=1e-4), "f32 mismatch vs reference"

    # --- Test 2: bf16 inputs & output (f32 scratch-accumulator path).
    xb = x.astype(jnp.bfloat16)
    wb = w.astype(jnp.bfloat16)
    refb = reference_normed_linear(xb.astype(jnp.float32), wb.astype(jnp.float32))
    outb = jax.block_until_ready(normed_linear(xb, wb))
    assert outb.dtype == jnp.bfloat16 and outb.shape == (N, out_f)
    assert jnp.allclose(outb.astype(jnp.float32), refb, atol=1e-2, rtol=1e-2), \
        "bf16 mismatch vs reference"

    # --- Test 3: multi-K-block accumulation path (forced small K tiles),
    #     bf16 MXU operands with f32 output accumulated in place.
    N2, in2, M2 = 16, 256, 128
    x2 = jax.random.normal(kx2, (N2, in2), dtype=jnp.float32)
    w2 = init_normed_linear_weight(kw2, in2, M2)
    x2b = x2.astype(jnp.bfloat16)
    w2b = w2.astype(jnp.bfloat16)
    ref2 = reference_normed_linear(x2b.astype(jnp.float32), w2b.astype(jnp.float32))
    out2 = jax.block_until_ready(
        normed_linear(x2b, w2b, out_dtype=jnp.float32, k_block_limit=128))
    assert out2.shape == (N2, M2)
    assert jnp.allclose(out2, ref2, atol=1e-3, rtol=1e-3), "multi-K mismatch vs reference"

    print("KERNEL_OK")
</pallas_src>

<mosaic_0001>
module attributes {stable_mosaic.version = 11 : i64} {
  func.func @_normed_linear_kernel(%arg0: i32, %arg1: i32, %arg2: i32, %arg3: memref<8x1xf32, #tpu.memory_space<vmem>>, %arg4: memref<1x128xf32, #tpu.memory_space<vmem>>, %arg5: memref<8x128xf32, #tpu.memory_space<vmem>>, %arg6: memref<128x128xf32, #tpu.memory_space<vmem>>, %arg7: memref<8x128xf32, #tpu.memory_space<vmem>>) attributes {dimension_semantics = [#tpu.dimension_semantics<parallel>, #tpu.dimension_semantics<parallel>, #tpu.dimension_semantics<arbitrary>], iteration_bounds = array<i64: 1, 1, 1>, scalar_prefetch = 0 : i64, scratch_operands = 0 : i64, tpu.core_type = #tpu.core_type<tc>, window_params = [{transform_indices = @transform_0, window_bounds = array<i64: 8, 1>}, {transform_indices = @transform_1, window_bounds = array<i64: 1, 128>}, {transform_indices = @transform_2, window_bounds = array<i64: 8, 128>}, {transform_indices = @transform_3, window_bounds = array<i64: 128, 128>}, {transform_indices = @transform_4, window_bounds = array<i64: 8, 128>}]} {
    %c0_i32 = arith.constant 0 : i32
    %0 = arith.cmpi eq, %arg2, %c0_i32 : i32
    %1 = arith.extui %0 : i1 to i32
    %c0_i32_0 = arith.constant 0 : i32
    %2 = arith.cmpi ne, %1, %c0_i32_0 : i32
    scf.if %2 {
      %cst_10 = arith.constant 0.000000e+00 : f32
      %12 = vector.broadcast %cst_10 : f32 to vector<8x128xf32>
      %c0_11 = arith.constant 0 : index
      %c0_12 = arith.constant 0 : index
      %13 = vector.load %arg7[%c0_11, %c0_12] : memref<8x128xf32, #tpu.memory_space<vmem>>, vector<8x128xf32>
      tpu.vector_store %arg7[%c0_11, %c0_12], %12 {strides = array<i32>} : memref<8x128xf32, #tpu.memory_space<vmem>>, vector<8x128xf32>,
    } else {
    }
    %c0 = arith.constant 0 : index
    %c0_1 = arith.constant 0 : index
    %3 = vector.load %arg7[%c0, %c0_1] : memref<8x128xf32, #tpu.memory_space<vmem>>, vector<8x128xf32>
    %c0_2 = arith.constant 0 : index
    %c0_3 = arith.constant 0 : index
    %4 = vector.load %arg5[%c0_2, %c0_3] : memref<8x128xf32, #tpu.memory_space<vmem>>, vector<8x128xf32>
    %c0_4 = arith.constant 0 : index
    %c0_5 = arith.constant 0 : index
    %5 = vector.load %arg6[%c0_4, %c0_5] : memref<128x128xf32, #tpu.memory_space<vmem>>, vector<128x128xf32>
    %cst = arith.constant dense<0.000000e+00> : vector<8x128xf32>
    %6 = tpu.matmul %4, %5, %cst {dimension_numbers = #tpu.dot_dimension_numbers<[1], [0], [0], [1], [0, 0, 1, 1], [], []>} : vector<8x128xf32>, vector<128x128xf32>, vector<8x128xf32> -> vector<8x128xf32>
    %7 = arith.addf %3, %6 : vector<8x128xf32>
    %c0_6 = arith.constant 0 : index
    %c0_7 = arith.constant 0 : index
    %8 = vector.load %arg7[%c0_6, %c0_7] : memref<8x128xf32, #tpu.memory_space<vmem>>, vector<8x128xf32>
    tpu.vector_store %arg7[%c0_6, %c0_7], %7 {strides = array<i32>} : memref<8x128xf32, #tpu.memory_space<vmem>>, vector<8x128xf32>,
    %c0_i32_8 = arith.constant 0 : i32
    %9 = arith.cmpi eq, %arg2, %c0_i32_8 : i32
    %10 = arith.extui %9 : i1 to i32
    %c0_i32_9 = arith.constant 0 : i32
    %11 = arith.cmpi ne, %10, %c0_i32_9 : i32
    scf.if %11 {
      %c0_10 = arith.constant 0 : index
      %c0_11 = arith.constant 0 : index
      %12 = vector.load %arg7[%c0_10, %c0_11] : memref<8x128xf32, #tpu.memory_space<vmem>>, vector<8x128xf32>
      %c0_12 = arith.constant 0 : index
      %c0_13 = arith.constant 0 : index
      %13 = vector.load %arg3[%c0_12, %c0_13] : memref<8x1xf32, #tpu.memory_space<vmem>>, vector<8x1xf32>
      %14 = vector.broadcast %13 : vector<8x1xf32> to vector<8x128xf32>
      %15 = arith.mulf %12, %14 : vector<8x128xf32>
      %c0_14 = arith.constant 0 : index
      %c0_15 = arith.constant 0 : index
      %16 = vector.load %arg4[%c0_14, %c0_15] : memref<1x128xf32, #tpu.memory_space<vmem>>, vector<1x128xf32>
      %17 = vector.broadcast %16 : vector<1x128xf32> to vector<8x128xf32>
      %18 = arith.mulf %15, %17 : vector<8x128xf32>
      %c0_16 = arith.constant 0 : index
      %c0_17 = arith.constant 0 : index
      %19 = vector.load %arg7[%c0_16, %c0_17] : memref<8x128xf32, #tpu.memory_space<vmem>>, vector<8x128xf32>
      tpu.vector_store %arg7[%c0_16, %c0_17], %18 {strides = array<i32>} : memref<8x128xf32, #tpu.memory_space<vmem>>, vector<8x128xf32>,
    } else {
    }
    return
  }
  func.func @transform_0(%arg0: i32, %arg1: i32, %arg2: i32) -> (i32, i32) {
    %c0_i32 = arith.constant 0 : i32
    %c0_i32_0 = arith.constant 0 : i32
    return %arg0, %c0_i32 : i32, i32
  }
  func.func @transform_1(%arg0: i32, %arg1: i32, %arg2: i32) -> (i32, i32) {
    %c0_i32 = arith.constant 0 : i32
    %c0_i32_0 = arith.constant 0 : i32
    return %c0_i32, %arg1 : i32, i32
  }
  func.func @transform_2(%arg0: i32, %arg1: i32, %arg2: i32) -> (i32, i32) {
    %c0_i32 = arith.constant 0 : i32
    return %arg0, %arg2 : i32, i32
  }
  func.func @transform_3(%arg0: i32, %arg1: i32, %arg2: i32) -> (i32, i32) {
    %c0_i32 = arith.constant 0 : i32
    return %arg2, %arg1 : i32, i32
  }
  func.func @transform_4(%arg0: i32, %arg1: i32, %arg2: i32) -> (i32, i32) {
    %c0_i32 = arith.constant 0 : i32
    return %arg0, %arg1 : i32, i32
  }
}

</mosaic_0001>

<bundles_post_ra>
// kernel: normed_linear.1
= control target key start
LH: loop header
LB: loop body
LE: loop exit
PB: predicated region body
PF: predicated region fallthrough
CT: control target
= control target key end

     0   :  { %v227_v1 = vmov 0.0   ;;  %vm228_vm0 = vmmov 0   ;;  %v229_v3 = vmov 0   ;;  %s316_s0 = inlined_call_operand.vmem [shape: f32[8,1], index: 0, kind: input, shape index: {}]   ;;  %s317_s1 = inlined_call_operand.vmem [shape: f32[1,128], index: 1, kind: input, shape index: {}]   ;;  %s318_s2 = inlined_call_operand.vmem [shape: f32[8,128], index: 2, kind: input, shape index: {}]   ;;  %s319_s3 = inlined_call_operand.vmem [shape: f32[128,128], index: 3, kind: input, shape index: {}]   ;;  %s320_s4 = inlined_call_operand.hbm [shape: f32[8,128], index: 4, kind: output, shape index: {}]  }
   0x1   :  { %v40_v0 = vld [vmem:[%s319_s3 + $0x78] sm:$0xff]  ;;  %165 = vmatprep.subr.mxu0 %v227_v1  ;;  %v39_v2 = vld [vmem:[%s319_s3 + $0x70] sm:$0xff]  ;;  %197 = vmatprep.mubr.msk.f32.mxu0 %vm228_vm0, %v227_v1  ;;  %v38_v4 = vld [vmem:[%s319_s3 + $0x68] sm:$0xff] }
   0x2   :  { %166 = vmatpush3.msra.mxu0 %v40_v0  ;;  %204 = vset.pattern.permute.xlu0 %v229_v3  ;;  %v37_v5 = vld [vmem:[%s319_s3 + $0x60] sm:$0xff] }
   0x3   :  { %167 = vmatprep.subr.mxu0 %v227_v1  ;;  %v117_v6 = vld [vmem:[%s316_s0] sm:$0xff] }
   0x4   :  { %168 = vmatpush3.msra.mxu0 %v39_v2  ;;  %120 = vperm.xlu0 %204, %v117_v6  }
   0x5   :  { %169 = vmatprep.subr.mxu0 %v227_v1 }
   0x6   :  { %170 = vmatpush3.msra.mxu0 %v38_v4 }
   0x7   :  { %9 = vsyncpa [#allocation3], 0  ;;  %171 = vmatprep.subr.mxu0 %v227_v1  ;;  %v36_v7 = vld [vmem:[%s319_s3 + $0x58] sm:$0xff]  ;;  %v35_v8 = vld [vmem:[%s319_s3 + $0x50] sm:$0xff]  ;;  %s230_s26 = smov [#allocation2]  }
   0x8   :  { %172 = vmatpush3.msra.mxu0 %v37_v5  ;;  %v34_v9 = vld [vmem:[%s319_s3 + $0x48] sm:$0xff]  ;;  %v33_v10 = vld [vmem:[%s319_s3 + $0x40] sm:$0xff]  ;;  %v32_v11 = vld [vmem:[%s319_s3 + $0x38] sm:$0xff]  ;;  %s139_s27 = sshll.u32 %s230_s26, 4  ;;  %s140_s27 = int_to_ptr.vmem [resolvable:$true] %s139_s27 }
   0x9   :  { %173 = vmatprep.subr.mxu0 %v227_v1  ;;  %v31_v12 = vld [vmem:[%s319_s3 + $0x30] sm:$0xff]  ;;  %v30_v13 = vld [vmem:[%s319_s3 + $0x28] sm:$0xff]  ;;  %v29_v14 = vld [vmem:[%s319_s3 + $0x20] sm:$0xff]  ;;  %p210_p1 = scmp.lt.s32.totalorder %s140_s27, %s140_s27 }
   0xa   :  { %174 = vmatpush3.msra.mxu0 %v36_v7  ;;  %v28_v15 = vld [vmem:[%s319_s3 + $0x18] sm:$0xff]  ;;  %v27_v16 = vld [vmem:[%s319_s3 + $0x10] sm:$0xff]  ;;  %v26_v17 = vld [vmem:[%s319_s3 + $0x8] sm:$0xff] }
   0xb   :  { %175 = vmatprep.subr.mxu0 %v227_v1  ;;  %v25_v18 = vld [vmem:[%s319_s3] sm:$0xff]  ;;  %s205_s3 = scalar_lea.vmem %s140_s27, 128 }
   0xc   :  { %176 = vmatpush3.msra.mxu0 %v35_v8  ;;  %v24_v19 = vld [vmem:[%s318_s2] sm:$0xff]  ;;  %p206_p0 = scmp.ne.s32.totalorder %s140_s27, %s205_s3  ;;  %p211_p2 = scmp.lt.s32.totalorder %s205_s3, %s205_s3 }
   0xd   :  { %177 = vmatprep.subr.mxu0 %v227_v1  ;;  %v147_v23 = vld [vmem:[%s317_s1] ss:$0 sm:$0xff] }
   0xe   :  { %178 = vmatpush3.msra.mxu0 %v34_v9  ;;  %p212_p3 = por %p211_p2, %p210_p1 }
   0xf   :  { %179 = vmatprep.subr.mxu0 %v227_v1 }
  0x10   :  { %180 = vmatpush3.msra.mxu0 %v33_v10  ;;  %p213_p4 = pnand %p212_p3, %p206_p0 }
  0x11   :  { %181 = vmatprep.subr.mxu0 %v227_v1 }
  0x12   :  { %182 = vmatpush3.msra.mxu0 %v32_v11 }
  0x13   :  { %183 = vmatprep.subr.mxu0 %v227_v1 }
  0x14   :  { %184 = vmatpush3.msra.mxu0 %v31_v12 }
  0x15   :  { %185 = vmatprep.subr.mxu0 %v227_v1 }
  0x16   :  { %186 = vmatpush3.msra.mxu0 %v30_v13 }
  0x17   :  { %187 = vmatprep.subr.mxu0 %v227_v1 }
  0x18   :  { %188 = vmatpush3.msra.mxu0 %v29_v14 }
  0x19   :  { %189 = vmatprep.subr.mxu0 %v227_v1 }
  0x1a   :  { %190 = vmatpush3.msra.mxu0 %v28_v15 }
  0x1b   :  { %191 = vmatprep.subr.mxu0 %v227_v1 }
  0x1c   :  { %192 = vmatpush3.msra.mxu0 %v27_v16 }
  0x1d   :  { %193 = vmatprep.subr.mxu0 %v227_v1 }
  0x1e   :  { %194 = vmatpush3.msra.mxu0 %v26_v17 }
  0x1f   :  { %195 = vmatprep.subr.mxu0 %v227_v1 }
  0x20   :  { %196 = vmatpush3.msra.mxu0 %v25_v18 }
  0x21   :  { %198 = vmatmul.mubr.f32.vlgmr.msra.gmra.mxu0 %v24_v19 }
  0x7f   :  { %v121_v21 = vpop.permute.xlu0 %120 }
  0xe1   :  { %v107_v20 = vpop.f32.mrf.mxu0 }
  0xe2   :  { %v123_v24 = vmul.f32 %v121_v21, %v107_v20 }
  0xe3   :  { %v199_v22 = vpop.f32.mrf.mxu0 }
  0xe4   :  { %v131_v25 = vmul.f32 %v147_v23, %v123_v24 }
  0xe6   :  { %132 = vst [vmem:[#allocation2] sm:$0xff] %v131_v25 }
  0xe7   :  { %216 = shalt.err (!%p213_p4)
}
  0xe8   :  { %142 = dma.vmem_to_hbm [thread:$0]  %s140_s27, 128, %s320_s4, [#allocation3]  }
  0xe9   :  { %225 = dma.done.wait [#allocation3], 128  }
  0xea   :  { %226 = vsyncadd [#allocation3], 4294967168 }
  0xeb   :  { %146 = vsyncpa [#allocation3], 1 }

</bundles_post_ra>
